<compile_context>
chip_gen: v7x
topology: tpu7x:2x2x1
jax: 0.10.0
libtpu: 0.0.40
codegen_flags: <defaults>
</compile_context>

<pallas_src>
import functools

import jax
import jax.numpy as jnp
from jax.experimental import pallas as pl
from jax.experimental.pallas import tpu as pltpu


def _ce_argmax_kernel(n_valid, xT_ref, labels_ref, loss_ref, pred_ref):
    """Per-tile cross-entropy partial sum + argmax, batch-on-lanes layout.

    xT_ref:     [C, TN]     logits (classes on sublanes, batch rows on lanes)
    labels_ref: [1, TN]     int32 true class per batch row
    loss_ref:   [1, 8, 128] f32 per-tile partial sum of -log softmax(x)[label]
                            (splatted across the slab; wrapper reads [:, 0, 0])
    pred_ref:   [1, TN]     int32 per-row argmax over classes
    """
    x = xT_ref[...].astype(jnp.float32)                       # [C, TN]
    labels = labels_ref[...]                                   # [1, TN]
    c, tn = x.shape

    m = jnp.max(x, axis=0, keepdims=True)                      # [1, TN]
    lse = jnp.log(jnp.sum(jnp.exp(x - m), axis=0, keepdims=True))

    # Logit of the true class via a one-hot mask (no dynamic gather on TPU).
    # NOTE: out-of-range labels silently select 0.0 (PyTorch would raise).
    row = jax.lax.broadcasted_iota(jnp.int32, x.shape, 0)      # class idx / sublane
    sel = jnp.sum(jnp.where(row == labels, x, 0.0), axis=0, keepdims=True)

    # nll = -(x[label] - m - lse); log-probs never materialised as a [C,TN] temp.
    nll = lse + m - sel                                         # [1, TN]

    # Mask off padded batch columns (tail tile), then reduce to a per-tile
    # partial sum -> only a 4 KiB slab goes back to HBM instead of 4*N bytes.
    col = jax.lax.broadcasted_iota(jnp.int32, (1, tn), 1) + pl.program_id(0) * tn
    nll = jnp.where(col < n_valid, nll, 0.0)
    loss_ref[...] = jnp.full(loss_ref.shape, jnp.sum(nll), dtype=jnp.float32)

    # Argmax reusing the softmax max; min-index tie-break == first occurrence,
    # matching torch.max(1)[1] / jnp.argmax semantics.
    pred_ref[...] = jnp.min(
        jnp.where(x == m, row, c), axis=0, keepdims=True
    ).astype(jnp.int32)


def cross_entropy_and_pred_cn(logits_cn, labels, *, tile_n=32768):
    """Class-major fast path (preferred).

    logits_cn: [C, N] float (f32/bf16) - batch rides the 128-wide lane axis, so
               no wrapper-side transpose/pad HBM round trip is needed.
    labels:    [N] int.
    Returns (scalar mean CE loss (f32), [N] int32 preds), matching
    nn.CrossEntropyLoss(reduction='mean') and tensor.max(1)[1].

    Tile guidance: 32768 (default) fits everywhere; ~65536 on v6e/v7x.
    """
    c, n = logits_cn.shape
    labels = labels.astype(jnp.int32)

    # Lane-aligned batch tiles, sized to minimise tail padding.
    tile_n = max(128, min(int(tile_n), 65536))
    num_tiles = pl.cdiv(n, tile_n)
    tn = 128 * pl.cdiv(pl.cdiv(n, num_tiles), 128)
    n_pad = num_tiles * tn

    # Guarded pads: skipped when N is already tile aligned.
    if n_pad != n:
        logits_cn = jnp.pad(logits_cn, ((0, 0), (0, n_pad - n)))
        labels = jnp.pad(labels, (0, n_pad - n))
    labels2d = labels.reshape(1, n_pad)

    # Scoped-VMEM budget: double-buffered blocks + generous f32 temporaries.
    itemsize = jnp.dtype(logits_cn.dtype).itemsize
    c_pad = 8 * pl.cdiv(c, 8)
    vmem_est = (2 * c_pad * tn * itemsize      # logits in (double buffered)
                + 2 * 8 * tn * 4               # labels in ((1,tn) -> 8 sublanes)
                + 2 * 8 * tn * 4               # preds out
                + 2 * 8 * 128 * 4              # loss partial-sum slab
                + 6 * c_pad * tn * 4)          # in-kernel f32 temporaries
    vmem_limit = int(max(32 << 20, min(vmem_est + (8 << 20), 48 << 20)))

    loss_parts, preds = pl.pallas_call(
        functools.partial(_ce_argmax_kernel, n),
        out_shape=(
            jax.ShapeDtypeStruct((num_tiles, 8, 128), jnp.float32),
            jax.ShapeDtypeStruct((1, n_pad), jnp.int32),
        ),
        grid=(num_tiles,),
        in_specs=[
            pl.BlockSpec((c, tn), lambda i: (0, i)),
            pl.BlockSpec((1, tn), lambda i: (0, i)),
        ],
        out_specs=(
            pl.BlockSpec((1, 8, 128), lambda i: (i, 0, 0)),
            pl.BlockSpec((1, tn), lambda i: (0, i)),
        ),
        compiler_params=pltpu.CompilerParams(
            # Per-tile outputs, no carried accumulator -> batch axis parallel.
            # TODO(synk): on v7x, verify both TensorCores are used; switch to
            # pltpu.CORE_PARALLEL if the profile shows a single core.
            dimension_semantics=("parallel",),
            vmem_limit_bytes=vmem_limit,
        ),
    )(logits_cn, labels2d)

    # Two-level mean: per-tile partial sums (kernel) -> global sum (here).
    loss = jnp.sum(loss_parts[:, 0, 0]) / jnp.float32(n)
    return loss, preds[0, :n]


def cross_entropy_and_pred(logits, labels, *, tile_n=32768, min_pallas_rows=256):
    """Drop-in [N, C] API matching the module's y_pred layout."""
    n, c = logits.shape
    labels = labels.astype(jnp.int32)

    if n < min_pallas_rows:
        # Toy sizes: kernel launch / per-step overhead dominates; XLA fuses this.
        logp = jax.nn.log_softmax(logits.astype(jnp.float32), axis=-1)
        loss = -jnp.mean(jnp.take_along_axis(logp, labels[:, None], axis=-1))
        preds = jnp.argmax(logits, axis=-1).astype(jnp.int32)
        return loss, preds

    # TODO(synk): prefer producing logits class-major upstream (swap the final
    # classifier matmul operand order - free) and calling the _cn entry point;
    # this transpose is one extra HBM round trip kept only for API compat.
    return cross_entropy_and_pred_cn(jnp.transpose(logits), labels, tile_n=tile_n)


def _reference(logits_nc, labels):
    logp = jax.nn.log_softmax(logits_nc.astype(jnp.float32), axis=-1)
    loss = -jnp.mean(
        jnp.take_along_axis(logp, labels[:, None].astype(jnp.int32), axis=-1))
    preds = jnp.argmax(logits_nc, axis=-1).astype(jnp.int32)
    return loss, preds


if __name__ == "__main__":
    key = jax.random.PRNGKey(0)
    num_classes = 10   # y_pred is [batch, num_classes] as in the module
    failures = []

    def run_case(tag, loss, preds, logits_nc, labels):
        loss, preds = jax.block_until_ready((loss, preds))
        loss_ref, preds_ref = _reference(logits_nc, labels)
        if not jnp.allclose(loss, loss_ref, rtol=1e-5, atol=1e-5):
            failures.append(f"{tag}: loss {loss} vs {loss_ref}")
        if not jnp.array_equal(preds, preds_ref):
            failures.append(f"{tag}: pred mismatch")

    # 1) [N, C] compat API, multi-tile with a ragged tail (pad + in-kernel mask).
    key, k1, k2 = jax.random.split(key, 3)
    logits = jax.random.normal(k1, (1000, num_classes), jnp.float32)
    labels = jax.random.randint(k2, (1000,), 0, num_classes, jnp.int32)
    run_case("nc_ragged",
             *cross_entropy_and_pred(logits, labels, tile_n=256, min_pallas_rows=64),
             logits_nc=logits, labels=labels)

    # 2) Preferred class-major [C, N] path, default tile, lane-aligned batch
    #    (exercises the pad-guard skip; module batch_size in train_model is 128).
    key, k1, k2 = jax.random.split(key, 3)
    logits_cn = jax.random.normal(k1, (num_classes, 256), jnp.float32)
    labels = jax.random.randint(k2, (256,), 0, num_classes, jnp.int32)
    run_case("cn_aligned",
             *cross_entropy_and_pred_cn(logits_cn, labels),
             logits_nc=jnp.transpose(logits_cn), labels=labels)

    # 3) bf16 logits accepted directly (the only upcast happens in-kernel).
    key, k1, k2 = jax.random.split(key, 3)
    logits_cn = jax.random.normal(k1, (num_classes, 384), jnp.bfloat16)
    labels = jax.random.randint(k2, (384,), 0, num_classes, jnp.int32)
    run_case("cn_bf16",
             *cross_entropy_and_pred_cn(logits_cn, labels),
             logits_nc=jnp.transpose(logits_cn), labels=labels)

    # 4) Tiny batch -> fused XLA fallback (no kernel launch).
    key, k1, k2 = jax.random.split(key, 3)
    logits = jax.random.normal(k1, (8, num_classes), jnp.float32)
    labels = jax.random.randint(k2, (8,), 0, num_classes, jnp.int32)
    run_case("nc_tiny", *cross_entropy_and_pred(logits, labels),
             logits_nc=logits, labels=labels)

    if failures:
        for f in failures:
            print("FAIL:", f)
    else:
        print("KERNEL_OK")
</pallas_src>

<mosaic_0001>
module attributes {stable_mosaic.version = 11 : i64} {
  func.func @_ce_argmax_kernel(%arg0: i32, %arg1: memref<10x256xf32, #tpu.memory_space<vmem>>, %arg2: memref<1x256xi32, #tpu.memory_space<vmem>>, %arg3: memref<1x8x128xf32, #tpu.memory_space<vmem>>, %arg4: memref<1x256xi32, #tpu.memory_space<vmem>>) attributes {dimension_semantics = [#tpu.dimension_semantics<parallel>], iteration_bounds = array<i64: 4>, scalar_prefetch = 0 : i64, scratch_operands = 0 : i64, tpu.core_type = #tpu.core_type<tc>, window_params = [{transform_indices = @transform_0, window_bounds = array<i64: 10, 256>}, {transform_indices = @transform_1, window_bounds = array<i64: 1, 256>}, {transform_indices = @transform_2, window_bounds = array<i64: 1, 8, 128>}, {transform_indices = @transform_3, window_bounds = array<i64: 1, 256>}]} {
    %c0 = arith.constant 0 : index
    %c0_0 = arith.constant 0 : index
    %0 = vector.load %arg1[%c0, %c0_0] : memref<10x256xf32, #tpu.memory_space<vmem>>, vector<10x256xf32>
    %c0_1 = arith.constant 0 : index
    %c0_2 = arith.constant 0 : index
    %1 = vector.load %arg2[%c0_1, %c0_2] : memref<1x256xi32, #tpu.memory_space<vmem>>, vector<1x256xi32>
    %cst = arith.constant dense<0xFF800000> : vector<256xf32>
    %2 = vector.multi_reduction <maximumf>, %0, %cst [0] : vector<10x256xf32> to vector<256xf32>
    %3 = vector.shape_cast %2 : vector<256xf32> to vector<1x256xf32>
    %4 = vector.broadcast %3 : vector<1x256xf32> to vector<10x256xf32>
    %5 = arith.subf %0, %4 : vector<10x256xf32>
    %6 = math.exp %5 : vector<10x256xf32>
    %cst_3 = arith.constant dense<0.000000e+00> : vector<256xf32>
    %7 = vector.multi_reduction <add>, %6, %cst_3 [0] : vector<10x256xf32> to vector<256xf32>
    %8 = vector.shape_cast %7 : vector<256xf32> to vector<1x256xf32>
    %9 = math.log %8 : vector<1x256xf32>
    %10 = tpu.iota {dimensions = array<i32: 0>} : vector<10x256xi32>
    %11 = vector.broadcast %1 : vector<1x256xi32> to vector<10x256xi32>
    %12 = arith.cmpi eq, %10, %11 : vector<10x256xi32>
    %cst_4 = arith.constant 0.000000e+00 : f32
    %13 = vector.broadcast %cst_4 : f32 to vector<10x256xf32>
    %14 = arith.select %12, %0, %13 : vector<10x256xi1>, vector<10x256xf32>
    %cst_5 = arith.constant dense<0.000000e+00> : vector<256xf32>
    %15 = vector.multi_reduction <add>, %14, %cst_5 [0] : vector<10x256xf32> to vector<256xf32>
    %16 = vector.shape_cast %15 : vector<256xf32> to vector<1x256xf32>
    %17 = arith.addf %9, %3 : vector<1x256xf32>
    %18 = arith.subf %17, %16 : vector<1x256xf32>
    %19 = tpu.iota {dimensions = array<i32: 1>} : vector<1x256xi32>
    %c256_i32 = arith.constant 256 : i32
    %20 = arith.muli %arg0, %c256_i32 : i32
    %21 = vector.broadcast %20 : i32 to vector<1x256xi32>
    %22 = arith.addi %19, %21 : vector<1x256xi32>
    %c1000_i32 = arith.constant 1000 : i32
    %23 = vector.broadcast %c1000_i32 : i32 to vector<1x256xi32>
    %24 = arith.cmpi slt, %22, %23 : vector<1x256xi32>
    %cst_6 = arith.constant 0.000000e+00 : f32
    %25 = vector.broadcast %cst_6 : f32 to vector<1x256xf32>
    %26 = arith.select %24, %18, %25 : vector<1x256xi1>, vector<1x256xf32>
    %27 = vector.shape_cast %26 : vector<1x256xf32> to vector<1x1x256xf32>
    %cst_7 = arith.constant dense<0.000000e+00> : vector<1xf32>
    %28 = vector.multi_reduction <add>, %27, %cst_7 [1, 2] : vector<1x1x256xf32> to vector<1xf32>
    %29 = vector.shape_cast %28 : vector<1xf32> to vector<1x1x1xf32>
    %30 = vector.extract %29[0, 0, 0] : f32 from vector<1x1x1xf32>
    %31 = vector.broadcast %30 : f32 to vector<1x8x128xf32>
    %c0_8 = arith.constant 0 : index
    %c0_9 = arith.constant 0 : index
    %c0_10 = arith.constant 0 : index
    %32 = vector.load %arg3[%c0_8, %c0_9, %c0_10] : memref<1x8x128xf32, #tpu.memory_space<vmem>>, vector<1x8x128xf32>
    tpu.vector_store %arg3[%c0_8, %c0_9, %c0_10], %31 {strides = array<i32>} : memref<1x8x128xf32, #tpu.memory_space<vmem>>, vector<1x8x128xf32>,
    %33 = vector.broadcast %3 : vector<1x256xf32> to vector<10x256xf32>
    %34 = arith.cmpf oeq, %0, %33 : vector<10x256xf32>
    %c10_i32 = arith.constant 10 : i32
    %35 = vector.broadcast %c10_i32 : i32 to vector<10x256xi32>
    %36 = arith.select %34, %10, %35 : vector<10x256xi1>, vector<10x256xi32>
    %cst_11 = arith.constant dense<2147483647> : vector<256xi32>
    %37 = vector.multi_reduction <minsi>, %36, %cst_11 [0] : vector<10x256xi32> to vector<256xi32>
    %38 = vector.shape_cast %37 : vector<256xi32> to vector<1x256xi32>
    %c0_12 = arith.constant 0 : index
    %c0_13 = arith.constant 0 : index
    %39 = vector.load %arg4[%c0_12, %c0_13] : memref<1x256xi32, #tpu.memory_space<vmem>>, vector<1x256xi32>
    tpu.vector_store %arg4[%c0_12, %c0_13], %38 {strides = array<i32>} : memref<1x256xi32, #tpu.memory_space<vmem>>, vector<1x256xi32>,
    return
  }
  func.func @transform_0(%arg0: i32) -> (i32, i32) {
    %c0_i32 = arith.constant 0 : i32
    %c0_i32_0 = arith.constant 0 : i32
    return %c0_i32, %arg0 : i32, i32
  }
  func.func @transform_1(%arg0: i32) -> (i32, i32) {
    %c0_i32 = arith.constant 0 : i32
    %c0_i32_0 = arith.constant 0 : i32
    return %c0_i32, %arg0 : i32, i32
  }
  func.func @transform_2(%arg0: i32) -> (i32, i32, i32) {
    %c0_i32 = arith.constant 0 : i32
    %c0_i32_0 = arith.constant 0 : i32
    %c0_i32_1 = arith.constant 0 : i32
    return %arg0, %c0_i32, %c0_i32_0 : i32, i32, i32
  }
  func.func @transform_3(%arg0: i32) -> (i32, i32) {
    %c0_i32 = arith.constant 0 : i32
    %c0_i32_0 = arith.constant 0 : i32
    return %c0_i32, %arg0 : i32, i32
  }
}

</mosaic_0001>

<bundles_post_ra>
// kernel: tpu_custom_call.1
= control target key start
LH: loop header
LB: loop body
LE: loop exit
PB: predicated region body
PF: predicated region fallthrough
CT: control target
= control target key end

     0   :  { %9 = vsyncpa [#allocation3], 0  ;;  %s1153_s0 = inlined_call_operand.hbm [shape: f32[10,1024], index: 0, kind: input, shape index: {}]   ;;  %s1154_s1 = inlined_call_operand.hbm [shape: s32[1,1024], index: 1, kind: input, shape index: {}]   ;;  %s1155_s2 = inlined_call_operand.hbm [shape: f32[4,8,128], index: 2, kind: output, shape index: {0}]   ;;  %s1156_s3 = inlined_call_operand.hbm [shape: s32[1,1024], index: 3, kind: output, shape index: {1}]  }
   0x1   :  { %11 = vsyncpa [#allocation3 + $0x1], 0 }
   0x2   :  { %12 = vsyncpa [#allocation6], 0 }
   0x3   :  { %14 = vsyncpa [#allocation6 + $0x1], 0 }
   0x4   :  { %15 = vsyncpa [#allocation4], 0 }
   0x5   :  { %17 = vsyncpa [#allocation4 + $0x1], 0 }
   0x6   :  { %18 = vsyncpa [#allocation9], 0 }
   0x7   :  { %20 = vsyncpa [#allocation9 + $0x1], 0  ;;  %s861_s12 = smov 0   ;;  %s863_s13 = smov 0  }
   0x8   :  { %s865_s14 = smov 0   ;;  %s867_s15 = smov 0  }
   0x9 LB: > { %s882_s16 = sadd.s32 4294967295, %s831_s15   ;;  %s570_s17 = sadd.s32 4294967294, %s831_s15   ;;  %s831_s15 = sphi %s867_s15, %s1173_s15   ;;  %s827_s14 = sphi %s865_s14, %s1172_s14   ;;  %s823_s13 = sphi %s863_s13, %s1171_s13   ;;  %s819_s12 = sphi %s861_s12, %s1170_s12  }
   0xa   : > { %s886_s18 = sadd.s32 1, %s831_s15   ;;  %s33_s19 = sadd.s32 1, %s827_s14 }
   0xb   : > { %s30_s20 = ssub.s32 %s831_s15, %s886_s18  ;;  %p40_p0 = scmp.ne.s32.totalorder %s827_s14, %s823_s13 }
   0xc   : > { %p31_p1 = scmp.eq.s32.totalorder %s30_s20, 0  ;;  %p41_p2 = scmp.eq.s32.totalorder %s831_s15, 0 }
   0xd   : > { %p46_p3 = scmp.ne.s32.totalorder %s823_s13, %s819_s12  ;;  %p47_p4 = scmp.eq.s32.totalorder %s882_s16, 0 }
   0xe   : > { %s898_s21 = scalar_select %p31_p1, %s827_s14, %s33_s19  }
   0xf   : > { %p900_p5 = por %p41_p2, %p40_p0  ;;  %p904_p6 = por %p47_p4, %p46_p3 }
  0x10   : > { %p96_p7 = scmp.eq.s32.totalorder %s882_s16, 3  ;;  %p102_p8 = scmp.eq.s32.totalorder %s570_s17, 3 }
  0x11   : > { %s1160_s23 = scalar_select %p904_p6, 1, 0 }
  0x12   : > { %p619_p9 = scmp.lt.s32.totalorder %s831_s15, 4  ;;  %p910_p10 = por %p96_p7, %p40_p0 }
  0x13   : > { %p914_p11 = por %p102_p8, %p46_p3  ;;  %s919_s26 = sand.u32 1, %s827_s14  }
  0x14   : > { %s1161_s24 = scalar_select %p910_p10, 1, 0 }
  0x15   : > { %s1162_s25 = scalar_select %p914_p11, 1, 0 }
  0x16   : > { %s592_s27 = sshll.u32 %s831_s15, 8  ;;  %s573_s28 = sshll.u32 %s919_s26, 5 }
  0x17   : > { %s926_s4 = scalar_lea.hbm %s1153_s0, %s592_s27  ;;  %s152_s5 = scalar_lea.vmem [#allocation2], %s573_s28 }
  0x18   : > { %s159_s6 = sshll.u32 %s152_s5, 4  ;;  %p930_p12 = pnand %p619_p9, %p900_p5  ;;  %s934_s6 = int_to_ptr.vmem [resolvable:$true] %s159_s6 }
  0x19   : > { %s149_s8 = scalar_lea.sflag [#allocation3], %s919_s26  ;;  %s669_s9 = scalar_lea.hbm %s926_s4, 512 }
  0x1a   : > { %p670_p0 = scmp.ne.s32.totalorder %s926_s4, %s669_s9  ;;  %p671_p1 = pneg %p930_p12 }
  0x1b   : > { %s674_s17 = scalar_lea.hbm %s1153_s0, 2048  ;;  %p675_p4 = scmp.lt.u32.totalorder %s926_s4, %s1153_s0 }
  0x1c   : > { %p672_p2 = pnand %p671_p1, %p670_p0  ;;  %p676_p5 = scmp.lt.u32.totalorder %s674_s17, %s669_s9 }
  0x1d   : > { %p678_p8 = scmp.lt.u32.totalorder %s669_s9, %s926_s4 }
  0x1e   : > { %p673_p3 = pneg %p672_p2  ;;  %p677_p7 = por %p676_p5, %p675_p4 }
  0x20   : > { %p679_p9 = por %p678_p8, %p677_p7 }
  0x22   : > { %p680_p13 = pnand %p679_p9, %p673_p3 }
  0x24   : > { %683 = shalt.err (!%p680_p13)
}
  0x25   : > { %s684_s22 = scalar_lea.vmem %s934_s6, 512  ;;  %s833_s27 = smov [#allocation2]  }
  0x26   : > { %p685_p0 = scmp.ne.s32.totalorder %s934_s6, %s684_s22  ;;  %s689_s28 = sshll.u32 %s833_s27, 4  ;;  %s690_s28 = int_to_ptr.vmem [resolvable:$false] %s689_s28 }
  0x27   : > { %s691_s29 = scalar_lea.vmem %s690_s28, 1024  ;;  %p692_p10 = scmp.lt.s32.totalorder %s934_s6, %s690_s28 }
  0x28   : > { %p687_p2 = pnand %p685_p0, %p671_p1  ;;  %p693_p4 = scmp.lt.s32.totalorder %s691_s29, %s684_s22 }
  0x2a   : > { %p688_p11 = pneg %p687_p2  ;;  %p694_p5 = por %p693_p4, %p692_p10 }
  0x2c   : > { %p695_p7 = pnand %p694_p5, %p688_p11 }
  0x2e   : > { %698 = shalt.err (!%p695_p7)
}
  0x2f   : > { %s834_s30 = smov 1024   ;;  %s835_s5 = smov 256  }
  0x30   : > { %s836_s9 = smov 16   ;;  %p186_p13 = scmp.lt.s32.totalorder %s831_s15, 5 }
  0x31   : > { %608 = dma.hbm_to_vmem [thread:$0]  (!%p930_p12), %s926_s4, 512, %s934_s6, %s149_s8, %s834_s30, %s835_s5, %s836_s9  }
  0x32   : > { %s576_s10 = sshll.u32 %s919_s26, 1  ;;  %s593_s11 = sshll.u32 %s831_s15, 5 }
  0x33   : > { %p1164_p10 = scmp.ge.s32.totalorder %s831_s15, 1  ;;  %s977_s22 = scalar_lea.hbm %s1154_s1, %s593_s11 }
  0x34   : > { %s173_s27 = scalar_lea.vmem [#allocation5], %s576_s10  ;;  %s170_s4 = scalar_lea.sflag [#allocation6], %s919_s26 }
  0x35   : > { %p970_p11 = pnand %p1164_p10, %p186_p13  ;;  %s181_s28 = sshll.u32 %s173_s27, 4  ;;  %s182_s28 = int_to_ptr.vmem [resolvable:$true] %s181_s28 }
  0x36   : > { %s699_s6 = scalar_lea.hbm %s977_s22, 32  ;;  %s704_s30 = scalar_lea.hbm %s1154_s1, 128 }
  0x37   : > { %s1165_s17 = scalar_select %p970_p11, 1, 0 }
  0x38   : > { %p700_p3 = scmp.ne.s32.totalorder %s977_s22, %s699_s6  ;;  %p705_p0 = scmp.lt.u32.totalorder %s977_s22, %s1154_s1 }
  0x39   : > { %p706_p2 = scmp.lt.u32.totalorder %s704_s30, %s699_s6  ;;  %p708_p5 = scmp.lt.u32.totalorder %s699_s6, %s977_s22 }
  0x3a   : > { %p702_p8 = pnand %p700_p3, %p671_p1 }
  0x3b   : > { %p707_p4 = por %p706_p2, %p705_p0 }
  0x3c   : > { %p703_p9 = pneg %p702_p8 }
  0x3d   : > { %p709_p7 = por %p708_p5, %p707_p4 }
  0x3f   : > { %p710_p13 = pnand %p709_p7, %p703_p9 }
  0x41   : > { %713 = shalt.err (!%p710_p13)
}
  0x42   : > { %s714_s26 = scalar_lea.vmem %s182_s28, 32  ;;  %s837_s10 = smov [#allocation5]  }
  0x43   : > { %p715_p10 = scmp.ne.s32.totalorder %s182_s28, %s714_s26  ;;  %s719_s11 = sshll.u32 %s837_s10, 4  ;;  %s720_s11 = int_to_ptr.vmem [resolvable:$false] %s719_s11 }
  0x44   : > { %s721_s19 = scalar_lea.vmem %s720_s11, 64  ;;  %p722_p6 = scmp.lt.s32.totalorder %s182_s28, %s720_s11 }
  0x45   : > { %p717_p3 = pnand %p715_p10, %p671_p1  ;;  %p723_p11 = scmp.lt.s32.totalorder %s721_s19, %s714_s26 }
  0x47   : > { %p718_p8 = pneg %p717_p3  ;;  %p724_p0 = por %p723_p11, %p722_p6 }
  0x49   : > { %p725_p2 = pnand %p724_p0, %p718_p8 }
  0x4b   : > { %728 = shalt.err (!%p725_p2)
}
  0x4c   : > { %611 = dma.hbm_to_vmem [thread:$0]  (!%p930_p12), %s977_s22, 32, %s182_s28, %s170_s4  }
  0x4d   : > { %p1166_p9 = scmp.ne.s32.totalorder %s1165_s17, 0 }
  0x4e   : > { %s1002_s20 = sand.u32 (!%p1166_p9), 1, %s823_s13   ;;  %p1167_p1 = scmp.ne.s32.totalorder (!%p1166_p9), %s1160_s23, 0 }
  0x4f   : > { %190 = sbr.rel (%p1166_p9) target bundleno = 380 (0x17c), region = 28  ;;  %s580_s27 = sshll.u32 (!%p1166_p9), %s1002_s20, 5 }
  0x50   : > { %s193_s6 = scalar_lea.sflag (!%p1166_p9), [#allocation3], %s1002_s20  ;;  %s196_s8 = scalar_lea.vmem (!%p1166_p9), [#allocation2], %s580_s27 }
  0x56   : > { %802 = dma.done.wait (%p1167_p1), %s193_s6, 512  }
  0x57   : > { %804 = vsyncadd (%p1167_p1), %s193_s6, 4294966784  ;;  %s581_s7 = sshll.u32 %s1002_s20, 1  ;;  %s202_s17 = scalar_lea.sflag [#allocation6], %s1002_s20 }
  0x58   : > { %s1014_s22 = scalar_lea.vmem [#allocation5], %s581_s7 }
  0x59   : > { %806 = dma.done.wait (%p1167_p1), %s202_s17, 32  }
  0x5a   : > { %808 = vsyncadd (%p1167_p1), %s202_s17, 4294967264  ;;  %vm246_vm0 = vcmask 1041408   ;;  %v1020_v0 = vld [vmem:[%s196_s8] sm:$0xff]  ;;  %v1022_v1 = vld [vmem:[%s196_s8 + $0x8] sm:$0xff]  ;;  %v295_v15 = vlaneseq  ;;  %s584_s23 = sshll.u32 %s882_s16, 8  ;;  %vm345_vm13 = vcmask 1040384  }
  0x5b   : > { %v243_v2 = vld [vmem:[%s196_s8 + $0x10] sm:$0x3]  ;;  %v244_v3 = vld [vmem:[%s196_s8 + $0x18] sm:$0x3]  ;;  %v245_v31 = vld [vmem:[%s1014_s22] sm:$0x3] }
  0x5c   : > { %v247_v4 = vsel %vm246_vm0, %v243_v2, -inf  ;;  %v255_v6 = vsel %vm246_vm0, %v244_v3, -inf  ;;  %v1031_v20 = vshrl.u32 %v295_v15, 7  ;;  %s237_s28 = scalar_lea.vmem [#allocation8], %s581_s7  ;;  %s594_s4 = sshll.u32 %s882_s16, 5 }
  0x5d   : > { %v248_v5 = vmax.f32 %v1020_v0, %v247_v4  ;;  %v256_v7 = vmax.f32 %v1022_v1, %v255_v6  ;;  %s445_s29 = sshll.u32 %s237_s28, 4  ;;  %s1085_s9 = scalar_lea.hbm %s1156_s3, %s594_s4  ;;  %s446_s29 = int_to_ptr.vmem [resolvable:$true] %s445_s29 }
  0x5e   : > { %v297_v24 = vadd.s32 8, %v1031_v20  ;;  %v300_v29 = vsub.s32 0, %v1031_v20  ;;  %v304_v30 = vsub.s32 1, %v1031_v20  ;;  %s418_s26 = scalar_lea.sflag [#allocation9], %s1002_s20  ;;  %s729_s10 = scalar_lea.vmem %s446_s29, 32 }
  0x5f   : > { %v249_v8 = vrot.slane %v248_v5, 4  ;;  %v257_v9 = vrot.slane %v256_v7, 4  ;;  %p730_p6 = scmp.ne.s32.totalorder %s446_s29, %s729_s10  ;;  %p1168_p12 = scmp.ne.s32.totalorder %s1161_s24, 0 }
  0x60   : > { %v301_v38 = vrot.slane %v245_v31, %v300_v29  ;;  %v305_v41 = vrot.slane %v245_v31, %v304_v30  ;;  %s839_s11 = smov [#allocation8]  }
  0x61   : > { %v250_v10 = vmax.f32 %v248_v5, %v249_v8  ;;  %v258_v11 = vmax.f32 %v256_v7, %v257_v9  ;;  %p731_p11 = pnand %p730_p6, %p1168_p12  ;;  %s733_s19 = sshll.u32 %s839_s11, 4  ;;  %s734_s19 = int_to_ptr.vmem [resolvable:$false] %s733_s19 }
  0x62   : > { %vm308_vm7 = vcmp.eq.s32.totalorder %v297_v24, %v301_v38  ;;  %vm309_vm8 = vcmp.eq.s32.totalorder %v297_v24, %v305_v41  ;;  %vm306_vm9 = vcmp.eq.s32.totalorder %v1031_v20, %v301_v38  ;;  %vm307_vm10 = vcmp.eq.s32.totalorder %v1031_v20, %v305_v41  ;;  %s735_s27 = scalar_lea.vmem %s734_s19, 64  ;;  %p736_p5 = scmp.lt.s32.totalorder %s446_s29, %s734_s19 }
  0x63   : > { %v251_v12 = vrot.slane %v250_v10, 2  ;;  %v259_v13 = vrot.slane %v258_v11, 2  ;;  %v312_v44 = vsel %vm308_vm7, %v243_v2, 0.0  ;;  %v313_v46 = vsel %vm309_vm8, %v244_v3, 0.0  ;;  %p732_p4 = pneg %p731_p11  ;;  %p737_p7 = scmp.lt.s32.totalorder %s735_s27, %s729_s10 }
  0x64   : > { %v310_v49 = vsel %vm306_vm9, %v1020_v0, 0.0  ;;  %v314_v50 = vsel %vm246_vm0, %v312_v44, 0.0  ;;  %v311_v53 = vsel %vm307_vm10, %v1022_v1, 0.0  ;;  %v322_v54 = vsel %vm246_vm0, %v313_v46, 0.0 }
  0x65   : > { %v252_v14 = vmax.f32 %v250_v10, %v251_v12  ;;  %v260_v16 = vmax.f32 %v258_v11, %v259_v13  ;;  %v315_v58 = vadd.f32 %v314_v50, %v310_v49  ;;  %v323_v60 = vadd.f32 %v322_v54, %v311_v53  ;;  %p738_p13 = por %p737_p7, %p736_p5 }
  0x67   : > { %v253_v17 = vrot.slane %v252_v14, 1  ;;  %v261_v18 = vrot.slane %v260_v16, 1  ;;  %p739_p10 = pnand %p738_p13, %p732_p4 }
  0x69   : > { %v1028_v19 = vmax.f32 %v252_v14, %v253_v17  ;;  %v1033_v21 = vmax.f32 %v260_v16, %v261_v18  ;;  %v335_v16 = vand.u32 127, %v295_v15 }
  0x6b   : > { %v263_v22 = vsub.f32 %v1020_v0, %v1028_v19  ;;  %v265_v23 = vsub.f32 %v243_v2, %v1028_v19  ;;  %v264_v25 = vsub.f32 %v1022_v1, %v1033_v21  ;;  %v266_v26 = vsub.f32 %v244_v3, %v1033_v21 }
  0x6c   : > { %vm360_vm1 = vcmp.eq.f32.partialorder %v1020_v0, %v1028_v19  ;;  %vm361_vm2 = vcmp.eq.f32.partialorder %v1022_v1, %v1033_v21  ;;  %vm362_vm3 = vcmp.eq.f32.partialorder %v243_v2, %v1028_v19  ;;  %vm363_vm4 = vcmp.eq.f32.partialorder %v244_v3, %v1033_v21 }
  0x6d   : > { %v267_v27 = vmul.f32 1.442695, %v263_v22  ;;  %v271_v28 = vmul.f32 1.442695, %v265_v23  ;;  %v269_v32 = vmul.f32 1.442695, %v264_v25  ;;  %v338_v23 = vstv %s584_s23 }
  0x6e   : > { %v273_v33 = vmul.f32 1.442695, %v266_v26  ;;  %v364_v34 = vsel %vm360_vm1, %v1031_v20, 10  ;;  %v365_v35 = vsel %vm361_vm2, %v1031_v20, 10  ;;  %v366_v36 = vsel %vm362_vm3, %v297_v24, 10 }
  0x6f   : > { %657 = vpow2.f32 %v267_v27  ;;  %v367_v37 = vsel %vm363_vm4, %v297_v24, 10  ;;  %v368_v39 = vsel %vm246_vm0, %v366_v36, 2147483647  ;;  %v316_v0 = vrot.slane %v315_v58, 4 }
  0x70   : > { %659 = vpow2.f32 %v269_v32  ;;  %v380_v40 = vsel %vm246_vm0, %v367_v37, 2147483647  ;;  %vm369_vm5 = vcmp.lt.s32.totalorder %v364_v34, %v368_v39  ;;  %v324_v3 = vrot.slane %v323_v60, 4 }
  0x71   : > { %661 = vpow2.f32 %v271_v28  ;;  %vm381_vm6 = vcmp.lt.s32.totalorder %v365_v35, %v380_v40  ;;  %v1055_v42 = vsel %vm369_vm5, %v364_v34, %v368_v39  ;;  %v317_v1 = vadd.f32 %v316_v0, %v315_v58 }
  0x72   : > { %663 = vpow2.f32 %v273_v33  ;;  %v1057_v43 = vsel %vm381_vm6, %v365_v35, %v380_v40  ;;  %v325_v8 = vadd.f32 %v324_v3, %v323_v60  ;;  %v336_v22 = vadd.s32 128, %v335_v16 }
  0x73   : > { %v318_v12 = vrot.slane %v317_v1, 2  ;;  %v339_v26 = vadd.s32 %v338_v23, %v335_v16  ;;  %v371_v44 = vrot.slane %v1055_v42, 4  ;;  %vm409_vm4 = vcmp.lt.s32.totalorder %v295_v15, 256 }
  0x74   : > { %v326_v13 = vrot.slane %v325_v8, 2  ;;  %v340_v30 = vadd.s32 %v338_v23, %v336_v22 }
  0x75   : > { %v319_v14 = vadd.f32 %v318_v12, %v317_v1  ;;  %vm341_vm11 = vcmp.lt.s32.totalorder %v339_v26, 1000  ;;  %vm372_vm14 = vcmp.lt.s32.totalorder %v1055_v42, %v371_v44 }
  0x76   : > { %v327_v17 = vadd.f32 %v326_v13, %v325_v8  ;;  %vm342_vm12 = vcmp.lt.s32.totalorder %v340_v30, 1000 }
  0x77   : > { %v320_v18 = vrot.slane %v319_v14, 1 }
  0x78   : > { %v328_v24 = vrot.slane %v327_v17, 1 }
  0x79   : > { %v658_v45 = vpop.eup %657  ;;  %v321_v29 = vadd.f32 %v320_v18, %v319_v14 }
  0x7a   : > { %v660_v47 = vpop.eup %659  ;;  %v329_v32 = vadd.f32 %v328_v24, %v327_v17 }
  0x7b   : > { %v662_v48 = vpop.eup %661 }
  0x7c   : > { %v664_v51 = vpop.eup %663  ;;  %v275_v52 = vsel %vm246_vm0, %v662_v48, 0.0 }
  0x7d   : > { %v276_v55 = vadd.f32 %v658_v45, %v275_v52  ;;  %v283_v56 = vsel %vm246_vm0, %v664_v51, 0.0  ;;  %v383_v45 = vrot.slane %v1057_v43, 4  ;;  %v838_v52 = vmov 1966171168  }
  0x7e   : > { %v284_v57 = vadd.f32 %v660_v47, %v283_v56  ;;  %v394_v53 = vunpack.c.l.s4 %v838_v52 }
  0x7f   : > { %v277_v59 = vrot.slane %v276_v55, 4  ;;  %vm384_vm15 = vcmp.lt.s32.totalorder %v1057_v43, %v383_v45 }
  0x80   : > { %v285_v61 = vrot.slane %v284_v57, 4  ;;  %v395_v54 = vunpack.c.0.s8 %v394_v53 }
  0x81   : > { %v278_v62 = vadd.f32 %v277_v59, %v276_v55 }
  0x82   : > { %v286_v63 = vadd.f32 %v285_v61, %v284_v57  ;;  %v398_v56 = vsub.s32 %v395_v54, %v1031_v20 }
  0x83   : > { %v279_v2 = vrot.slane %v278_v62, 2 }
  0x84   : > { %v287_v4 = vrot.slane %v286_v63, 2 }
  0x85   : > { %v280_v5 = vadd.f32 %v279_v2, %v278_v62 }
  0x86   : > { %v288_v6 = vadd.f32 %v287_v4, %v286_v63 }
  0x87   : > { %v281_v7 = vrot.slane %v280_v5, 1 }
  0x88   : > { %v289_v9 = vrot.slane %v288_v6, 1 }
  0x89   : > { %v282_v10 = vadd.f32 %v281_v7, %v280_v5 }
  0x8a   : > { %v290_v11 = vadd.f32 %v289_v9, %v288_v6 }
  0x8b   : > { %665 = vlog2.f32 %v282_v10 }
  0x8c   : > { %667 = vlog2.f32 %v290_v11 }
  0x95   : > { %v666_v25 = vpop.eup %665 }
  0x96   : > { %v668_v27 = vpop.eup %667  ;;  %v292_v28 = vmul.f32 0.6931472, %v666_v25 }
  0x97   : > { %v294_v31 = vmul.f32 0.6931472, %v668_v27 }
  0x98   : > { %v330_v33 = vadd.f32 %v292_v28, %v1028_v19  ;;  %v373_v19 = vsel %vm372_vm14, %v1055_v42, %v371_v44 }
  0x99   : > { %v331_v34 = vadd.f32 %v294_v31, %v1033_v21  ;;  %v385_v21 = vsel %vm384_vm15, %v1057_v43, %v383_v45  ;;  %v374_v46 = vrot.slane %v373_v19, 2 }
  0x9a   : > { %v332_v35 = vsub.f32 %v330_v33, %v321_v29  ;;  %v386_v47 = vrot.slane %v385_v21, 2 }
  0x9b   : > { %v333_v36 = vsub.f32 %v331_v34, %v329_v32  ;;  %vm375_vm0 = vcmp.lt.s32.totalorder %v373_v19, %v374_v46 }
  0x9c   : > { %v343_v37 = vsel %vm341_vm11, %v332_v35, 0.0  ;;  %vm387_vm1 = vcmp.lt.s32.totalorder %v385_v21, %v386_v47  ;;  %v376_v48 = vsel %vm375_vm0, %v373_v19, %v374_v46 }
  0x9d   : > { %v344_v38 = vsel %vm342_vm12, %v333_v36, 0.0  ;;  %v346_v39 = vsel %vm345_vm13, %v343_v37, 0.0  ;;  %v388_v49 = vsel %vm387_vm1, %v385_v21, %v386_v47  ;;  %v377_v50 = vrot.slane %v376_v48, 1 }
  0x9e   : > { %v347_v40 = vsel %vm345_vm13, %v344_v38, 0.0  ;;  %v389_v51 = vrot.slane %v388_v49, 1 }
  0x9f   : > { %v348_v41 = vadd.f32 %v347_v40, %v346_v39  ;;  %vm378_vm2 = vcmp.lt.s32.totalorder %v376_v48, %v377_v50 }
  0xa0   : > { %vm390_vm3 = vcmp.lt.s32.totalorder %v388_v49, %v389_v51  ;;  %v379_v55 = vsel %vm378_vm2, %v376_v48, %v377_v50 }
  0xa1   : > { %349 = vadd.xlane.f32.xlu0 %v348_v41  ;;  %v391_v42 = vsel %vm390_vm3, %v388_v49, %v389_v51 }
  0xa2   : > { %v392_v43 = vcombine.low %v379_v55, %v391_v42 }
  0xa4   : > { %v399_v57 = vrot.slane %v392_v43, %v398_v56 }
  0xa6   : > { %v406_v58 = vrot.slane %v399_v57, %v398_v56 }
  0xa8   : > { %411 = vst.msk [vmem:[%s237_s28] sm:$0x3] %vm409_vm4, %v406_v58 }
  0xa9   : > { %742 = shalt.err (!%p739_p10)
}
  0xaa   : > { %s743_s6 = scalar_lea.hbm %s1085_s9, 32  ;;  %s747_s17 = scalar_lea.hbm %s1156_s3, 128 }
  0xab   : > { %p744_p3 = scmp.ne.s32.totalorder %s1085_s9, %s743_s6  ;;  %p748_p2 = scmp.lt.u32.totalorder %s1085_s9, %s1156_s3 }
  0xac   : > { %p749_p9 = scmp.lt.u32.totalorder %s747_s17, %s743_s6  ;;  %p751_p6 = scmp.lt.u32.totalorder %s743_s6, %s1085_s9 }
  0xad   : > { %p745_p8 = pnand %p744_p3, %p1168_p12 }
  0xae   : > { %p750_p1 = por %p749_p9, %p748_p2 }
  0xaf   : > { %p746_p0 = pneg %p745_p8 }
  0xb0   : > { %p752_p11 = por %p751_p6, %p750_p1 }
  0xb2   : > { %p753_p4 = pnand %p752_p11, %p746_p0 }
  0xb4   : > { %756 = shalt.err (!%p753_p4)
}
  0xb5   : > { %602 = dma.vmem_to_hbm [thread:$0]  (%p1168_p12), %s446_s29, 32, %s1085_s9, %s418_s26  }
  0xb6   : > { %s582_s28 = sshll.u32 %s1002_s20, 3  ;;  %s587_s5 = sshll.u32 %s882_s16, 7 }
  0xb7   : > { %s230_s4 = scalar_lea.vmem [#allocation7], %s582_s28  ;;  %s1112_s10 = scalar_lea.hbm %s1155_s2, %s587_s5 }
  0xb8   : > { %s431_s30 = sshll.u32 %s230_s4, 4  ;;  %s413_s11 = scalar_lea.sflag [#allocation4], %s1002_s20  ;;  %s1107_s30 = int_to_ptr.vmem [resolvable:$true] %s431_s30 }
  0xb9   : > { %s757_s19 = scalar_lea.vmem %s1107_s30, 128  ;;  %s840_s16 = smov [#allocation7]  }
  0xba   : > { %p758_p5 = scmp.ne.s32.totalorder %s1107_s30, %s757_s19  ;;  %s761_s27 = sshll.u32 %s840_s16, 4  ;;  %s762_s27 = int_to_ptr.vmem [resolvable:$false] %s761_s27 }
  0xbb   : > { %s763_s6 = scalar_lea.vmem %s762_s27, 256  ;;  %p764_p10 = scmp.lt.s32.totalorder %s1107_s30, %s762_s27 }
  0xbc   : > { %p759_p7 = pnand %p758_p5, %p1168_p12  ;;  %p765_p3 = scmp.lt.s32.totalorder %s763_s6, %s757_s19 }
  0xbe   : > { %p760_p13 = pneg %p759_p7  ;;  %p766_p8 = por %p765_p3, %p764_p10 }
  0xc0   : > { %p767_p0 = pnand %p766_p8, %p760_p13 }
 0x12e   : > { %v350_v15 = vpop.xlane.xlu0 %349 }
 0x12f   : > { %v351_v20 = vrot.slane %v350_v15, 4 }
 0x131   : > { %v352_v59 = vadd.f32 %v351_v20, %v350_v15 }
 0x133   : > { %v353_v60 = vrot.slane %v352_v59, 2 }
 0x135   : > { %v354_v61 = vadd.f32 %v353_v60, %v352_v59 }
 0x137   : > { %v355_v62 = vrot.slane %v354_v61, 1 }
 0x139   : > { %v356_v63 = vadd.f32 %v355_v62, %v354_v61 }
 0x13b   : > { %595 = vpush %v356_v63 }
 0x16c   : > { %s596_s29 = spop %595 }
 0x16d   : > { %v358_v0 = vstv %s596_s29 }
 0x16e   : > { %359 = vst [vmem:[%s230_s4] sm:$0xff] %v358_v0 }
 0x16f   : > { %770 = shalt.err (!%p767_p0)
}
 0x170   : > { %s771_s20 = scalar_lea.hbm %s1112_s10, 128  ;;  %s775_s17 = scalar_lea.hbm %s1155_s2, 512 }
 0x171   : > { %p772_p2 = scmp.ne.s32.totalorder %s1112_s10, %s771_s20  ;;  %p776_p6 = scmp.lt.u32.totalorder %s1112_s10, %s1155_s2 }
 0x172   : > { %p777_p11 = scmp.lt.u32.totalorder %s775_s17, %s771_s20  ;;  %p779_p5 = scmp.lt.u32.totalorder %s771_s20, %s1112_s10 }
 0x173   : > { %p773_p9 = pnand %p772_p2, %p1168_p12 }
 0x174   : > { %p778_p4 = por %p777_p11, %p776_p6 }
 0x175   : > { %p774_p1 = pneg %p773_p9 }
 0x176   : > { %p780_p7 = por %p779_p5, %p778_p4 }
 0x178   : > { %p781_p13 = pnand %p780_p7, %p774_p1 }
 0x17a   : > { %784 = shalt.err (!%p781_p13)
}
 0x17b   : > { %601 = dma.vmem_to_hbm [thread:$0]  (%p1168_p12), %s1107_s30, 128, %s1112_s10, %s413_s11  }
 0x17c PF: > { %p620_p10 = scmp.ge.s32.totalorder %s831_s15, 2  ;;  %s457_s28 = sand.u32 1, %s819_s12  }
 0x17d   : > { %p1169_p3 = scmp.ne.s32.totalorder %s1162_s25, 0  ;;  %s458_s4 = scalar_lea.sflag [#allocation4], %s457_s28 }
 0x17f   : > { %p613_p8 = pnand %p620_p10, %p1169_p3 }
 0x181   : > { %810 = dma.done.wait (!%p613_p8), %s458_s4, 128  }
 0x182   : > { %812 = vsyncadd (!%p613_p8), %s458_s4, 4294967168  ;;  %s467_s5 = scalar_lea.sflag [#allocation9], %s457_s28 }
 0x183   : > { %814 = dma.done.wait (!%p613_p8), %s467_s5, 32  }
 0x184   : > { %816 = vsyncadd (!%p613_p8), %s467_s5, 4294967264  ;;  %p23_p12 = scmp.ge.s32.totalorder %s886_s18, 6   ;;  %s1170_s12 = smov %s823_s13 }
 0x185   : > { %s1171_s13 = smov %s827_s14  ;;  %s1172_s14 = smov %s898_s21 }
 0x186   : > { %s1173_s15 = smov %s886_s18  ;;  %25 = sbr.rel (!%p23_p12) target bundleno = 9 (0x9), region = 103 }
 0x18d   :  { %472 = vsyncpa [#allocation3], 1 }
 0x18e   :  { %474 = vsyncpa [#allocation3 + $0x1], 1 }
 0x18f   :  { %475 = vsyncpa [#allocation6], 1 }
 0x190   :  { %477 = vsyncpa [#allocation6 + $0x1], 1 }
 0x191   :  { %478 = vsyncpa [#allocation4], 1 }
 0x192   :  { %480 = vsyncpa [#allocation4 + $0x1], 1 }
 0x193   :  { %481 = vsyncpa [#allocation9], 1 }
 0x194   :  { %483 = vsyncpa [#allocation9 + $0x1], 1 }

</bundles_post_ra>
